<compile_context>
chip_gen: v6e
topology: v6e:2x2x1
jax: 0.10.0
libtpu: 0.0.40
codegen_flags: <defaults>
</compile_context>

<pallas_src>
import jax
import jax.numpy as jnp
from jax import lax
from jax.experimental import pallas as pl
from jax.experimental.pallas import tpu as pltpu

H1 = 256        # first hidden width
H2 = 64         # logical second hidden width
H2_PAD = 128    # lane-dense padded second hidden width
OUT = 2         # logical output features
OUT_T_ROWS = 8  # sublane-padded row count of the transposed output


def _round_up(x, m):
    return (x + m - 1) // m * m


def _cdiv(a, b):
    return (a + b - 1) // b


def _generator_mlp_kernel(x_ref, w1_ref, b1_ref, w2_ref, b2_ref, w3t_ref,
                          b3t_ref, ot_ref):
    # x tile arrives as f32; cast to bf16 in-kernel (VPU slot otherwise idle).
    x = x_ref[...].astype(jnp.bfloat16)

    # Layer 1: bf16 MXU matmul, f32 accumulate; bias + ReLU in f32.
    h1 = jnp.dot(x, w1_ref[...], preferred_element_type=jnp.float32)
    h1 = jnp.maximum(h1 + b1_ref[...], 0.0)

    # Layer 2 (hidden padded 64 -> 128; padded lanes stay exactly 0 thru ReLU).
    h2 = jnp.dot(h1.astype(jnp.bfloat16), w2_ref[...],
                 preferred_element_type=jnp.float32)
    h2 = jnp.maximum(h2 + b2_ref[...], 0.0)

    # Layer 3, computed transposed so the store is compact and lane-dense:
    #   out_t[c, r] = sum_k w3t[c, k] * h2[r, k]   ->  (8, TB) instead of (TB, 128)
    out_t = lax.dot_general(
        w3t_ref[...], h2.astype(jnp.bfloat16),
        dimension_numbers=(((1,), (1,)), ((), ())),
        preferred_element_type=jnp.float32)
    ot_ref[...] = (out_t + b3t_ref[...]).astype(ot_ref.dtype)


def init_params(key, in_size):
    """Deterministic init matching nn.Linear shapes (stored transposed), f32."""
    ks = jax.random.split(key, 6)

    def linear(kw, kb, fan_in, fan_out):
        bound = 1.0 / jnp.sqrt(fan_in)
        w = jax.random.uniform(kw, (fan_in, fan_out), jnp.float32, -bound, bound)
        b = jax.random.uniform(kb, (1, fan_out), jnp.float32, -bound, bound)
        return w, b

    w1, b1 = linear(ks[0], ks[1], in_size, H1)
    w2, b2 = linear(ks[2], ks[3], H1, H2)
    w3, b3 = linear(ks[4], ks[5], H2, OUT)
    return (w1, b1, w2, b2, w3, b3)


def prep_params(params):
    """bf16 weights; pad hidden2 to 128 lanes; final layer stored transposed."""
    w1, b1, w2, b2, w3, b3 = params
    w1p = w1.astype(jnp.bfloat16)
    b1p = b1.astype(jnp.float32)
    w2p = jnp.pad(w2, ((0, 0), (0, H2_PAD - H2))).astype(jnp.bfloat16)
    b2p = jnp.pad(b2, ((0, 0), (0, H2_PAD - H2))).astype(jnp.float32)
    # w3t[c, k] = w3[k, c]; pad to (8, 128) so the (8, TB) result stays exact.
    w3t = jnp.pad(w3.T, ((0, OUT_T_ROWS - OUT), (0, H2_PAD - H2))).astype(jnp.bfloat16)
    b3t = jnp.pad(b3.T, ((0, OUT_T_ROWS - OUT), (0, 0))).astype(jnp.float32)
    return (w1p, b1p, w2p, b2p, w3t, b3t)


def generator_forward(x, prepped_params, max_tile=2048):
    """Fused MLP forward. x: (B, in_size) f32. Returns (B, 2) f32."""
    w1, b1, w2, b2, w3t, b3t = prepped_params
    B, in_size = x.shape

    # Batch tiling: multiples of 128 (lane-dense transposed output), balanced
    # tiles, and >=2 grid steps when possible so v7x's two TCs both get work.
    pb0 = _round_up(B, 128)
    n_tiles = _cdiv(pb0, max_tile)
    if n_tiles == 1 and pb0 >= 256:
        n_tiles = 2
    tb = _round_up(_cdiv(pb0, n_tiles), 128)
    n_tiles = _cdiv(pb0, tb)
    pb = n_tiles * tb

    xp = x if pb == B else jnp.pad(x, ((0, pb - B), (0, 0)))

    flops = 2 * pb * (in_size * H1 + H1 * H2_PAD + H2_PAD * OUT_T_ROWS)
    bytes_accessed = (
        pb * in_size * 4                        # f32 x stream
        + (w1.size + w2.size + w3t.size) * 2    # bf16 weights, fetched once
        + (b1.size + b2.size + b3t.size) * 4    # f32 biases, fetched once
        + OUT_T_ROWS * pb * 4                   # compact transposed f32 output
    )

    out_t = pl.pallas_call(
        _generator_mlp_kernel,
        out_shape=jax.ShapeDtypeStruct((OUT_T_ROWS, pb), jnp.float32),
        grid=(n_tiles,),
        in_specs=[
            pl.BlockSpec((tb, in_size), lambda i: (i, 0)),   # x: streamed f32 tiles
            pl.BlockSpec(w1.shape, lambda i: (0, 0)),        # params VMEM-resident
            pl.BlockSpec(b1.shape, lambda i: (0, 0)),
            pl.BlockSpec(w2.shape, lambda i: (0, 0)),
            pl.BlockSpec(b2.shape, lambda i: (0, 0)),
            pl.BlockSpec(w3t.shape, lambda i: (0, 0)),
            pl.BlockSpec(b3t.shape, lambda i: (0, 0)),
        ],
        out_specs=pl.BlockSpec((OUT_T_ROWS, tb), lambda i: (0, i)),
        compiler_params=pltpu.CompilerParams(
            dimension_semantics=("parallel",),   # megacore sharding on v7x
            vmem_limit_bytes=48 << 20,           # safe on v5e/v6e/v7x
        ),
        cost_estimate=pl.CostEstimate(
            flops=flops, transcendentals=0, bytes_accessed=bytes_accessed),
    )(xp, w1, b1, w2, b2, w3t, b3t)

    # Only the tiny (2, B) corner of the packed output is read / transposed.
    return out_t[:OUT, :B].T


def generator_reference_bf16(x, params):
    """Pure-JAX reference matching the kernel's bf16/f32 precision path."""
    w1, b1, w2, b2, w3, b3 = params
    xb = x.astype(jnp.bfloat16)
    h1 = jnp.maximum(
        jnp.dot(xb, w1.astype(jnp.bfloat16),
                preferred_element_type=jnp.float32) + b1, 0.0)
    h2 = jnp.maximum(
        jnp.dot(h1.astype(jnp.bfloat16), w2.astype(jnp.bfloat16),
                preferred_element_type=jnp.float32) + b2, 0.0)
    return jnp.dot(h2.astype(jnp.bfloat16), w3.astype(jnp.bfloat16),
                   preferred_element_type=jnp.float32) + b3


def generator_reference_f32(x, params):
    """Full-precision reference matching the original PyTorch module."""
    w1, b1, w2, b2, w3, b3 = params
    h = jnp.maximum(x @ w1 + b1, 0.0)
    h = jnp.maximum(h @ w2 + b2, 0.0)
    return h @ w3 + b3


if __name__ == "__main__":
    key = jax.random.PRNGKey(0)
    k_x, k_p = jax.random.split(key)

    B, in_size = 8, 32
    x = jax.random.normal(k_x, (B, in_size), jnp.float32)
    params = init_params(k_p, in_size)
    prepped = prep_params(params)

    out = generator_forward(x, prepped)
    out = jax.block_until_ready(out)
    assert out.shape == (B, OUT)
    assert bool(jnp.all(jnp.isfinite(out)))

    # Tight check vs an identical-precision (bf16 inputs, f32 accum) reference.
    ref_bf16 = generator_reference_bf16(x, params)
    assert jnp.allclose(out, ref_bf16, atol=1e-2, rtol=1e-2), (
        f"max abs diff vs bf16 ref: {jnp.max(jnp.abs(out - ref_bf16))}")

    # Loose check vs the full f32 PyTorch-equivalent math (bf16 cast error only).
    ref_f32 = generator_reference_f32(x, params)
    assert jnp.allclose(out, ref_f32, atol=1e-1, rtol=1e-1), (
        f"max abs diff vs f32 ref: {jnp.max(jnp.abs(out - ref_f32))}")

    print("KERNEL_OK")
</pallas_src>

<mosaic_0001>
module attributes {stable_mosaic.version = 11 : i64} {
  func.func @_generator_mlp_kernel(%arg0: i32, %arg1: memref<128x32xf32, #tpu.memory_space<vmem>>, %arg2: memref<32x256xbf16, #tpu.memory_space<vmem>>, %arg3: memref<1x256xf32, #tpu.memory_space<vmem>>, %arg4: memref<256x128xbf16, #tpu.memory_space<vmem>>, %arg5: memref<1x128xf32, #tpu.memory_space<vmem>>, %arg6: memref<8x128xbf16, #tpu.memory_space<vmem>>, %arg7: memref<8x1xf32, #tpu.memory_space<vmem>>, %arg8: memref<8x128xf32, #tpu.memory_space<vmem>>) attributes {dimension_semantics = [#tpu.dimension_semantics<parallel>], iteration_bounds = array<i64: 1>, scalar_prefetch = 0 : i64, scratch_operands = 0 : i64, tpu.core_type = #tpu.core_type<tc>, window_params = [{transform_indices = @transform_0, window_bounds = array<i64: 128, 32>}, {pipeline_mode = #tpu.pipeline_mode<synchronous>, transform_indices = @transform_1, window_bounds = array<i64: 32, 256>}, {pipeline_mode = #tpu.pipeline_mode<synchronous>, transform_indices = @transform_2, window_bounds = array<i64: 1, 256>}, {pipeline_mode = #tpu.pipeline_mode<synchronous>, transform_indices = @transform_3, window_bounds = array<i64: 256, 128>}, {pipeline_mode = #tpu.pipeline_mode<synchronous>, transform_indices = @transform_4, window_bounds = array<i64: 1, 128>}, {pipeline_mode = #tpu.pipeline_mode<synchronous>, transform_indices = @transform_5, window_bounds = array<i64: 8, 128>}, {pipeline_mode = #tpu.pipeline_mode<synchronous>, transform_indices = @transform_6, window_bounds = array<i64: 8, 1>}, {transform_indices = @transform_7, window_bounds = array<i64: 8, 128>}]} {
    %c0 = arith.constant 0 : index
    %c0_0 = arith.constant 0 : index
    %0 = vector.load %arg1[%c0, %c0_0] : memref<128x32xf32, #tpu.memory_space<vmem>>, vector<128x32xf32>
    %1 = arith.truncf %0 : vector<128x32xf32> to vector<128x32xbf16>
    %c0_1 = arith.constant 0 : index
    %c0_2 = arith.constant 0 : index
    %2 = vector.load %arg2[%c0_1, %c0_2] : memref<32x256xbf16, #tpu.memory_space<vmem>>, vector<32x256xbf16>
    %cst = arith.constant dense<0.000000e+00> : vector<128x256xf32>
    %3 = tpu.matmul %1, %2, %cst {dimension_numbers = #tpu.dot_dimension_numbers<[1], [0], [0], [1], [0, 0, 1, 1], [], []>} : vector<128x32xbf16>, vector<32x256xbf16>, vector<128x256xf32> -> vector<128x256xf32>
    %c0_3 = arith.constant 0 : index
    %c0_4 = arith.constant 0 : index
    %4 = vector.load %arg3[%c0_3, %c0_4] : memref<1x256xf32, #tpu.memory_space<vmem>>, vector<1x256xf32>
    %5 = vector.broadcast %4 : vector<1x256xf32> to vector<128x256xf32>
    %6 = arith.addf %3, %5 : vector<128x256xf32>
    %cst_5 = arith.constant 0.000000e+00 : f32
    %7 = vector.broadcast %cst_5 : f32 to vector<128x256xf32>
    %8 = arith.maximumf %6, %7 : vector<128x256xf32>
    %9 = arith.truncf %8 : vector<128x256xf32> to vector<128x256xbf16>
    %c0_6 = arith.constant 0 : index
    %c0_7 = arith.constant 0 : index
    %10 = vector.load %arg4[%c0_6, %c0_7] : memref<256x128xbf16, #tpu.memory_space<vmem>>, vector<256x128xbf16>
    %cst_8 = arith.constant dense<0.000000e+00> : vector<128x128xf32>
    %11 = tpu.matmul %9, %10, %cst_8 {dimension_numbers = #tpu.dot_dimension_numbers<[1], [0], [0], [1], [0, 0, 1, 1], [], []>} : vector<128x256xbf16>, vector<256x128xbf16>, vector<128x128xf32> -> vector<128x128xf32>
    %c0_9 = arith.constant 0 : index
    %c0_10 = arith.constant 0 : index
    %12 = vector.load %arg5[%c0_9, %c0_10] : memref<1x128xf32, #tpu.memory_space<vmem>>, vector<1x128xf32>
    %13 = vector.broadcast %12 : vector<1x128xf32> to vector<128x128xf32>
    %14 = arith.addf %11, %13 : vector<128x128xf32>
    %cst_11 = arith.constant 0.000000e+00 : f32
    %15 = vector.broadcast %cst_11 : f32 to vector<128x128xf32>
    %16 = arith.maximumf %14, %15 : vector<128x128xf32>
    %c0_12 = arith.constant 0 : index
    %c0_13 = arith.constant 0 : index
    %17 = vector.load %arg6[%c0_12, %c0_13] : memref<8x128xbf16, #tpu.memory_space<vmem>>, vector<8x128xbf16>
    %18 = arith.truncf %16 : vector<128x128xf32> to vector<128x128xbf16>
    %cst_14 = arith.constant dense<0.000000e+00> : vector<8x128xf32>
    %19 = tpu.matmul %17, %18, %cst_14 {dimension_numbers = #tpu.dot_dimension_numbers<[1], [1], [0], [0], [0, 0, 1, 0], [], []>} : vector<8x128xbf16>, vector<128x128xbf16>, vector<8x128xf32> -> vector<8x128xf32>
    %c0_15 = arith.constant 0 : index
    %c0_16 = arith.constant 0 : index
    %20 = vector.load %arg7[%c0_15, %c0_16] : memref<8x1xf32, #tpu.memory_space<vmem>>, vector<8x1xf32>
    %21 = vector.broadcast %20 : vector<8x1xf32> to vector<8x128xf32>
    %22 = arith.addf %19, %21 : vector<8x128xf32>
    %c0_17 = arith.constant 0 : index
    %c0_18 = arith.constant 0 : index
    %23 = vector.load %arg8[%c0_17, %c0_18] : memref<8x128xf32, #tpu.memory_space<vmem>>, vector<8x128xf32>
    tpu.vector_store %arg8[%c0_17, %c0_18], %22 {strides = array<i32>} : memref<8x128xf32, #tpu.memory_space<vmem>>, vector<8x128xf32>,
    return
  }
  func.func @transform_0(%arg0: i32) -> (i32, i32) {
    %c0_i32 = arith.constant 0 : i32
    %c0_i32_0 = arith.constant 0 : i32
    return %arg0, %c0_i32 : i32, i32
  }
  func.func @transform_1(%arg0: i32) -> (i32, i32) {
    %c0_i32 = arith.constant 0 : i32
    %c0_i32_0 = arith.constant 0 : i32
    %c0_i32_1 = arith.constant 0 : i32
    return %c0_i32, %c0_i32_0 : i32, i32
  }
  func.func @transform_2(%arg0: i32) -> (i32, i32) {
    %c0_i32 = arith.constant 0 : i32
    %c0_i32_0 = arith.constant 0 : i32
    %c0_i32_1 = arith.constant 0 : i32
    return %c0_i32, %c0_i32_0 : i32, i32
  }
  func.func @transform_3(%arg0: i32) -> (i32, i32) {
    %c0_i32 = arith.constant 0 : i32
    %c0_i32_0 = arith.constant 0 : i32
    %c0_i32_1 = arith.constant 0 : i32
    return %c0_i32, %c0_i32_0 : i32, i32
  }
  func.func @transform_4(%arg0: i32) -> (i32, i32) {
    %c0_i32 = arith.constant 0 : i32
    %c0_i32_0 = arith.constant 0 : i32
    %c0_i32_1 = arith.constant 0 : i32
    return %c0_i32, %c0_i32_0 : i32, i32
  }
  func.func @transform_5(%arg0: i32) -> (i32, i32) {
    %c0_i32 = arith.constant 0 : i32
    %c0_i32_0 = arith.constant 0 : i32
    %c0_i32_1 = arith.constant 0 : i32
    return %c0_i32, %c0_i32_0 : i32, i32
  }
  func.func @transform_6(%arg0: i32) -> (i32, i32) {
    %c0_i32 = arith.constant 0 : i32
    %c0_i32_0 = arith.constant 0 : i32
    %c0_i32_1 = arith.constant 0 : i32
    return %c0_i32, %c0_i32_0 : i32, i32
  }
  func.func @transform_7(%arg0: i32) -> (i32, i32) {
    %c0_i32 = arith.constant 0 : i32
    %c0_i32_0 = arith.constant 0 : i32
    return %c0_i32, %arg0 : i32, i32
  }
}

</mosaic_0001>

<bundles_post_ra>
// kernel: tpu_custom_call.1
= control target key start
LH: loop header
LB: loop body
LE: loop exit
PB: predicated region body
PF: predicated region fallthrough
CT: control target
= control target key end

     0   :  { %v763_v2 = vmov 0   ;;  %vm88_vm0 = vcmask 261120   ;;  %s1016_s0 = inlined_call_operand.vmem [shape: f32[128,32], index: 0, kind: input, shape index: {}]   ;;  %s1017_s1 = inlined_call_operand.vmem [shape: bf16[32,256], index: 1, kind: input, shape index: {}]   ;;  %s1018_s2 = inlined_call_operand.vmem [shape: f32[1,256], index: 2, kind: input, shape index: {}]   ;;  %s1019_s3 = inlined_call_operand.vmem [shape: bf16[256,128], index: 3, kind: input, shape index: {}]   ;;  %s1020_s4 = inlined_call_operand.vmem [shape: f32[1,128], index: 4, kind: input, shape index: {}]   ;;  %s1021_s5 = inlined_call_operand.vmem [shape: bf16[8,128], index: 5, kind: input, shape index: {}]   ;;  %s1022_s6 = inlined_call_operand.vmem [shape: f32[8,1], index: 6, kind: input, shape index: {}]   ;;  %s1023_s7 = inlined_call_operand.hbm [shape: f32[8,128], index: 7, kind: output, shape index: {}]  }
   0x1   :  { %v719_v0 = vld [vmem:[%s1017_s1 + $0x14] ss:$8 sps:$4 sm:$0xff]   ;;  %v721_v1 = vld [vmem:[%s1017_s1 + $0x10] ss:$8 sps:$4 sm:$0xff]   ;;  %145 = vmatprep.mubr.bf16.mxu0 %v763_v2  ;;  %718 = vset.pattern.permute.xlu0 %v763_v2  ;;  %v722_v3 = vld [vmem:[%s1017_s1 + $0x4] ss:$8 sps:$4 sm:$0xff]  }
   0x2   :  { %125 = vmatprep.subr.bf16.mxu0 %v719_v0  ;;  %v724_v4 = vld [vmem:[%s1017_s1] ss:$8 sps:$4 sm:$0xff]   ;;  %v725_v8 = vld [vmem:[%s1019_s3 + $0x78] sm:$0xff]   ;;  %v30_v9 = vld [vmem:[%s1016_s0 + $0x10] sm:$0xff] }
   0x3   :  { %126 = vmatpush1.bf16.msra.mxu0 %v721_v1  ;;  %v28_v5 = vld [vmem:[%s1016_s0] sm:$0xff]  ;;  %v29_v6 = vld [vmem:[%s1016_s0 + $0x8] sm:$0xff]  ;;  %v31_v10 = vld [vmem:[%s1016_s0 + $0x18] sm:$0xff]  ;;  %621 = vmatprep.subr.bf16.mxu1 %v725_v8 }
   0x4   :  { %127 = vmatprep.subr.bf16.mxu0 %v722_v3  ;;  %v44_v7 = vpack.c.bf16 %v29_v6, %v28_v5  ;;  %v726_v11 = vld [vmem:[%s1019_s3 + $0x38] sm:$0xff]   ;;  %v727_v12 = vld [vmem:[%s1019_s3 + $0x70] sm:$0xff]   ;;  %v729_v14 = vld [vmem:[%s1019_s3 + $0x68] sm:$0xff]   ;;  %v45_v15 = vpack.c.bf16 %v31_v10, %v30_v9 }
   0x5   :  { %622 = vmatpush3.bf16.msra.mxu1 %v726_v11  ;;  %v728_v13 = vld [vmem:[%s1019_s3 + $0x30] sm:$0xff]   ;;  %v730_v16 = vld [vmem:[%s1019_s3 + $0x28] sm:$0xff]   ;;  %v731_v17 = vld [vmem:[%s1019_s3 + $0x60] sm:$0xff]  }
   0x6   :  { %623 = vmatprep.subr.bf16.mxu1 %v727_v12  ;;  %v32_v18 = vld [vmem:[%s1016_s0 + $0x20] sm:$0xff]  ;;  %v33_v19 = vld [vmem:[%s1016_s0 + $0x28] sm:$0xff]  ;;  %v733_v21 = vld [vmem:[%s1019_s3 + $0x58] sm:$0xff]  }
   0x7   :  { %128 = vmatpush1.bf16.msra.mxu0 %v724_v4  ;;  %v732_v20 = vld [vmem:[%s1019_s3 + $0x20] sm:$0xff]   ;;  %v46_v22 = vpack.c.bf16 %v33_v19, %v32_v18 }
   0x9   :  { %624 = vmatpush3.bf16.msra.mxu1 %v728_v13 }
   0xa   :  { %596 = vmatmul.mubr.msk.bf16.vlgmr.msra.gmra.mxu0 %vm88_vm0, %v44_v7  ;;  %625 = vmatprep.subr.bf16.mxu1 %v729_v14 }
   0xb   :  { %155 = vmatprep.mubr.bf16.mxu0 %v763_v2 }
   0xd   :  { %626 = vmatpush3.bf16.msra.mxu1 %v730_v16 }
   0xe   :  { %627 = vmatprep.subr.bf16.mxu1 %v731_v17 }
  0x12   :  { %597 = vmatmul.mubr.msk.bf16.gmra.mxu0 %vm88_vm0, %v45_v15 }
  0x13   :  { %165 = vmatprep.mubr.bf16.mxu0 %v763_v2 }
  0x14   :  { %12 = vsyncpa [#allocation3], 0  ;;  %628 = vmatpush3.bf16.msra.mxu1 %v732_v20  ;;  %v734_v23 = vld [vmem:[%s1019_s3 + $0x18] sm:$0xff]   ;;  %v34_v24 = vld [vmem:[%s1016_s0 + $0x30] sm:$0xff]  ;;  %v58_v45 = vlaneseq  ;;  %vm765_vm1 = vmmov 0   ;;  %s766_s27 = smov [#allocation2]  }
  0x15   :  { %629 = vmatprep.subr.bf16.mxu1 %v733_v21  ;;  %v35_v25 = vld [vmem:[%s1016_s0 + $0x38] sm:$0xff]  ;;  %v36_v27 = vld [vmem:[%s1016_s0 + $0x40] sm:$0xff]  ;;  %v37_v28 = vld [vmem:[%s1016_s0 + $0x48] sm:$0xff]  ;;  %s584_s28 = sshll.u32 %s766_s27, 4  ;;  %s585_s28 = int_to_ptr.vmem [resolvable:$true] %s584_s28 }
  0x16   :  { %v47_v26 = vpack.c.bf16 %v35_v25, %v34_v24  ;;  %v48_v29 = vpack.c.bf16 %v37_v28, %v36_v27  ;;  %v38_v30 = vld [vmem:[%s1016_s0 + $0x50] sm:$0xff]  ;;  %v39_v31 = vld [vmem:[%s1016_s0 + $0x58] sm:$0xff]  ;;  %v40_v33 = vld [vmem:[%s1016_s0 + $0x60] sm:$0xff]  ;;  %v59_v46 = vshrl.u32 %v58_v45, 7  ;;  %s741_s29 = scalar_lea.vmem %s585_s28, 128  ;;  %p746_p1 = scmp.lt.s32.totalorder %s585_s28, %s585_s28 }
  0x17   :  { %v49_v32 = vpack.c.bf16 %v39_v31, %v38_v30  ;;  %v41_v34 = vld [vmem:[%s1016_s0 + $0x68] sm:$0xff]  ;;  %v42_v36 = vld [vmem:[%s1016_s0 + $0x70] sm:$0xff]  ;;  %v43_v37 = vld [vmem:[%s1016_s0 + $0x78] sm:$0xff]  ;;  %p742_p0 = scmp.ne.s32.totalorder %s585_s28, %s741_s29  ;;  %p747_p2 = scmp.lt.s32.totalorder %s741_s29, %s741_s29 }
  0x18   :  { %630 = vmatpush3.bf16.msra.mxu1 %v734_v23  ;;  %v50_v35 = vpack.c.bf16 %v41_v34, %v40_v33  ;;  %v51_v38 = vpack.c.bf16 %v43_v37, %v42_v36  ;;  %v735_v39 = vld [vmem:[%s1019_s3 + $0x50] sm:$0xff]   ;;  %v737_v41 = vld [vmem:[%s1019_s3 + $0x48] sm:$0xff]   ;;  %v739_v43 = vld [vmem:[%s1019_s3 + $0x40] sm:$0xff]   ;;  %v64_v47 = vsub.s32 1, %v59_v46  ;;  %v60_v48 = vsub.s32 0, %v59_v46 }
  0x19   :  { %v736_v40 = vld [vmem:[%s1019_s3 + $0x10] sm:$0xff]   ;;  %631 = vmatprep.subr.bf16.mxu1 %v735_v39  ;;  %v738_v42 = vld [vmem:[%s1019_s3 + $0x8] sm:$0xff]   ;;  %v740_v44 = vld [vmem:[%s1019_s3] sm:$0xff]   ;;  %p748_p3 = por %p747_p2, %p746_p1 }
  0x1a   :  { %598 = vmatmul.mubr.msk.bf16.gmra.mxu0 %vm88_vm0, %v46_v22  ;;  %v56_v49 = vld [vmem:[%s1018_s2] sm:$0x3] }
  0x1b   :  { %175 = vmatprep.mubr.bf16.mxu0 %v763_v2  ;;  %v935_v51 = vrot.slane %v56_v49, %v64_v47  ;;  %v937_v52 = vrot.slane %v56_v49, %v60_v48  ;;  %p749_p4 = pnand %p748_p3, %p742_p0 }
  0x1c   :  { %632 = vmatpush3.bf16.msra.mxu1 %v736_v40 }
  0x1d   :  { %633 = vmatprep.subr.bf16.mxu1 %v737_v41 }
  0x20   :  { %634 = vmatpush3.bf16.msra.mxu1 %v738_v42 }
  0x21   :  { %635 = vmatprep.subr.bf16.mxu1 %v739_v43 }
  0x22   :  { %599 = vmatmul.mubr.msk.bf16.gmra.mxu0 %vm88_vm0, %v47_v26 }
  0x23   :  { %185 = vmatprep.mubr.bf16.mxu0 %v763_v2 }
  0x24   :  { %636 = vmatpush3.bf16.msra.mxu1 %v740_v44 }
  0x2a   :  { %600 = vmatmul.mubr.msk.bf16.gmra.mxu0 %vm88_vm0, %v48_v29 }
  0x2b   :  { %195 = vmatprep.mubr.bf16.mxu0 %v763_v2 }
  0x32   :  { %601 = vmatmul.mubr.msk.bf16.gmra.mxu0 %vm88_vm0, %v49_v32 }
  0x33   :  { %205 = vmatprep.mubr.bf16.mxu0 %v763_v2 }
  0x3a   :  { %602 = vmatmul.mubr.msk.bf16.gmra.mxu0 %vm88_vm0, %v50_v35 }
  0x3b   :  { %215 = vmatprep.mubr.bf16.mxu0 %v763_v2 }
  0x42   :  { %603 = vmatmul.mubr.msk.bf16.gmra.mxu0 %vm88_vm0, %v51_v38 }
  0xca   :  { %v147_v50 = vpop.f32.mrf.mxu0 }
  0xcb   :  { %v148_v57 = vadd.f32 %v147_v50, %v937_v52 }
  0xcc   :  { %v149_v53 = vpop.f32.mrf.mxu0 }
  0xcd   :  { %v150_v55 = vadd.f32 %v149_v53, %v935_v51  ;;  %v226_v0 = vmax.f32 %v148_v57, 0.0 }
  0xce   :  { %v151_v54 = vpop.f32.mrf.mxu0 }
  0xcf   :  { %v152_v56 = vadd.f32 %v151_v54, %v937_v52  ;;  %v227_v62 = vmax.f32 %v150_v55, 0.0 }
  0xd0   :  { %v153_v58 = vpop.f32.mrf.mxu0 }
  0xd1   :  { %v154_v59 = vadd.f32 %v153_v58, %v935_v51  ;;  %v228_v60 = vmax.f32 %v152_v56, 0.0 }
  0xd2   :  { %v157_v61 = vpop.f32.mrf.mxu0 }
  0xd3   :  { %v229_v63 = vmax.f32 %v154_v59, 0.0  ;;  %v258_v3 = vpack.c.bf16 %v228_v60, %v226_v0  ;;  %v158_v7 = vadd.f32 %v157_v61, %v937_v52 }
  0xd4   :  { %v159_v1 = vpop.f32.mrf.mxu0 }
  0xd5   :  { %v259_v2 = vpack.c.bf16 %v229_v63, %v227_v62  ;;  %v160_v5 = vadd.f32 %v159_v1, %v935_v51  ;;  %v230_v14 = vmax.f32 %v158_v7, 0.0 }
  0xd6   :  { %v161_v4 = vpop.f32.mrf.mxu0 }
  0xd7   :  { %v162_v6 = vadd.f32 %v161_v4, %v937_v52  ;;  %441 = vmatprep.mubr.bf16.mxu1 %v259_v2  ;;  %v231_v12 = vmax.f32 %v160_v5, 0.0 }
  0xd8   :  { %v163_v8 = vpop.f32.mrf.mxu0  ;;  %442 = vmatmul.mubr.bf16.vlgmr.msra.gmra.mxu1 %v258_v3 }
  0xd9   :  { %v164_v9 = vadd.f32 %v163_v8, %v935_v51  ;;  %v232_v10 = vmax.f32 %v162_v6, 0.0 }
  0xda   :  { %v167_v11 = vpop.f32.mrf.mxu0 }
  0xdb   :  { %v233_v13 = vmax.f32 %v164_v9, 0.0  ;;  %v260_v17 = vpack.c.bf16 %v232_v10, %v230_v14  ;;  %v168_v21 = vadd.f32 %v167_v11, %v937_v52 }
  0xdc   :  { %v169_v15 = vpop.f32.mrf.mxu0 }
  0xdd   :  { %v261_v16 = vpack.c.bf16 %v233_v13, %v231_v12  ;;  %v170_v19 = vadd.f32 %v169_v15, %v935_v51  ;;  %v234_v28 = vmax.f32 %v168_v21, 0.0 }
  0xde   :  { %v171_v18 = vpop.f32.mrf.mxu0 }
  0xdf   :  { %v172_v20 = vadd.f32 %v171_v18, %v937_v52  ;;  %449 = vmatprep.mubr.bf16.mxu1 %v261_v16  ;;  %v235_v26 = vmax.f32 %v170_v19, 0.0 }
  0xe0   :  { %v173_v22 = vpop.f32.mrf.mxu0  ;;  %450 = vmatmul.mubr.bf16.gmra.mxu1 %v260_v17 }
  0xe1   :  { %v174_v23 = vadd.f32 %v173_v22, %v935_v51  ;;  %v236_v24 = vmax.f32 %v172_v20, 0.0 }
  0xe2   :  { %v177_v25 = vpop.f32.mrf.mxu0 }
  0xe3   :  { %v237_v27 = vmax.f32 %v174_v23, 0.0  ;;  %v262_v31 = vpack.c.bf16 %v236_v24, %v234_v28  ;;  %v178_v35 = vadd.f32 %v177_v25, %v937_v52 }
  0xe4   :  { %v179_v29 = vpop.f32.mrf.mxu0 }
  0xe5   :  { %v263_v30 = vpack.c.bf16 %v237_v27, %v235_v26  ;;  %v180_v33 = vadd.f32 %v179_v29, %v935_v51  ;;  %v238_v42 = vmax.f32 %v178_v35, 0.0 }
  0xe6   :  { %v181_v32 = vpop.f32.mrf.mxu0 }
  0xe7   :  { %v182_v34 = vadd.f32 %v181_v32, %v937_v52  ;;  %457 = vmatprep.mubr.bf16.mxu1 %v263_v30  ;;  %v239_v40 = vmax.f32 %v180_v33, 0.0 }
  0xe8   :  { %v183_v36 = vpop.f32.mrf.mxu0  ;;  %458 = vmatmul.mubr.bf16.gmra.mxu1 %v262_v31 }
  0xe9   :  { %v184_v37 = vadd.f32 %v183_v36, %v935_v51  ;;  %v240_v38 = vmax.f32 %v182_v34, 0.0 }
  0xea   :  { %v187_v39 = vpop.f32.mrf.mxu0 }
  0xeb   :  { %v241_v41 = vmax.f32 %v184_v37, 0.0  ;;  %v264_v45 = vpack.c.bf16 %v240_v38, %v238_v42  ;;  %v188_v49 = vadd.f32 %v187_v39, %v937_v52  ;;  %v764_v38 = vmov 0.0  }
  0xec   :  { %v189_v43 = vpop.f32.mrf.mxu0  ;;  %694 = vmatprep.subr.bf16.mxu0 %v764_v38  ;;  %710 = vmatprep.mubr.msk.bf16.mxu0 %vm765_vm1, %v764_v38 }
  0xed   :  { %v265_v44 = vpack.c.bf16 %v241_v41, %v239_v40  ;;  %v190_v47 = vadd.f32 %v189_v43, %v935_v51  ;;  %v242_v58 = vmax.f32 %v188_v49, 0.0  ;;  %v531_v43 = vld [vmem:[%s1022_s6] sm:$0xff] }
  0xee   :  { %v191_v46 = vpop.f32.mrf.mxu0  ;;  %534 = vperm.xlu0 %718, %v531_v43  }
  0xef   :  { %v192_v48 = vadd.f32 %v191_v46, %v937_v52  ;;  %465 = vmatprep.mubr.bf16.mxu1 %v265_v44  ;;  %v243_v56 = vmax.f32 %v190_v47, 0.0 }
  0xf0   :  { %v193_v50 = vpop.f32.mrf.mxu0  ;;  %466 = vmatmul.mubr.bf16.gmra.mxu1 %v264_v45 }
  0xf1   :  { %v194_v53 = vadd.f32 %v193_v50, %v935_v51  ;;  %v244_v54 = vmax.f32 %v192_v48, 0.0 }
  0xf2   :  { %v197_v55 = vpop.f32.mrf.mxu0 }
  0xf3   :  { %v245_v57 = vmax.f32 %v194_v53, 0.0  ;;  %v266_v61 = vpack.c.bf16 %v244_v54, %v242_v58  ;;  %v198_v1 = vadd.f32 %v197_v55, %v937_v52 }
  0xf4   :  { %v199_v59 = vpop.f32.mrf.mxu0 }
  0xf5   :  { %v267_v60 = vpack.c.bf16 %v245_v57, %v243_v56  ;;  %v200_v63 = vadd.f32 %v199_v59, %v935_v51  ;;  %v246_v8 = vmax.f32 %v198_v1, 0.0 }
  0xf6   :  { %v201_v62 = vpop.f32.mrf.mxu0 }
  0xf7   :  { %v202_v0 = vadd.f32 %v201_v62, %v937_v52  ;;  %473 = vmatprep.mubr.bf16.mxu1 %v267_v60  ;;  %v247_v6 = vmax.f32 %v200_v63, 0.0 }
  0xf8   :  { %v203_v2 = vpop.f32.mrf.mxu0  ;;  %474 = vmatmul.mubr.bf16.gmra.mxu1 %v266_v61 }
  0xf9   :  { %v204_v3 = vadd.f32 %v203_v2, %v935_v51  ;;  %v248_v4 = vmax.f32 %v202_v0, 0.0 }
  0xfa   :  { %v207_v5 = vpop.f32.mrf.mxu0 }
  0xfb   :  { %v249_v7 = vmax.f32 %v204_v3, 0.0  ;;  %v268_v11 = vpack.c.bf16 %v248_v4, %v246_v8  ;;  %v208_v15 = vadd.f32 %v207_v5, %v937_v52 }
  0xfc   :  { %v209_v9 = vpop.f32.mrf.mxu0 }
  0xfd   :  { %v269_v10 = vpack.c.bf16 %v249_v7, %v247_v6  ;;  %v210_v13 = vadd.f32 %v209_v9, %v935_v51  ;;  %v250_v22 = vmax.f32 %v208_v15, 0.0 }
  0xfe   :  { %v211_v12 = vpop.f32.mrf.mxu0 }
  0xff   :  { %v212_v14 = vadd.f32 %v211_v12, %v937_v52  ;;  %481 = vmatprep.mubr.bf16.mxu1 %v269_v10  ;;  %v251_v20 = vmax.f32 %v210_v13, 0.0 }
 0x100   :  { %v213_v16 = vpop.f32.mrf.mxu0  ;;  %482 = vmatmul.mubr.bf16.gmra.mxu1 %v268_v11 }
 0x101   :  { %v214_v17 = vadd.f32 %v213_v16, %v935_v51  ;;  %v252_v18 = vmax.f32 %v212_v14, 0.0 }
 0x102   :  { %v217_v19 = vpop.f32.mrf.mxu0 }
 0x103   :  { %v253_v21 = vmax.f32 %v214_v17, 0.0  ;;  %v270_v25 = vpack.c.bf16 %v252_v18, %v250_v22  ;;  %v218_v29 = vadd.f32 %v217_v19, %v937_v52 }
 0x104   :  { %v219_v23 = vpop.f32.mrf.mxu0 }
 0x105   :  { %v271_v24 = vpack.c.bf16 %v253_v21, %v251_v20  ;;  %v220_v27 = vadd.f32 %v219_v23, %v935_v51  ;;  %v254_v35 = vmax.f32 %v218_v29, 0.0 }
 0x106   :  { %v221_v26 = vpop.f32.mrf.mxu0 }
 0x107   :  { %v222_v28 = vadd.f32 %v221_v26, %v937_v52  ;;  %489 = vmatprep.mubr.bf16.mxu1 %v271_v24  ;;  %v255_v33 = vmax.f32 %v220_v27, 0.0 }
 0x108   :  { %v223_v30 = vpop.f32.mrf.mxu0  ;;  %490 = vmatmul.mubr.bf16.gmra.mxu1 %v270_v25 }
 0x109   :  { %v224_v31 = vadd.f32 %v223_v30, %v935_v51  ;;  %v256_v32 = vmax.f32 %v222_v28, 0.0  ;;  %v976_v51 = vld [vmem:[%s1020_s4] ss:$0 sm:$0xff] }
 0x10b   :  { %v257_v34 = vmax.f32 %v224_v31, 0.0  ;;  %v272_v37 = vpack.c.bf16 %v256_v32, %v254_v35 }
 0x10d   :  { %v273_v36 = vpack.c.bf16 %v257_v34, %v255_v33 }
 0x10f   :  { %497 = vmatprep.mubr.bf16.mxu1 %v273_v36 }
 0x110   :  { %498 = vmatmul.mubr.bf16.gmra.mxu1 %v272_v37 }
 0x198   :  { %v637_v39 = vpop.f32.mrf.mxu1 }
 0x19a   :  { %v638_v52 = vpop.f32.mrf.mxu1 }
 0x19b   :  { %v639_v40 = vadd.f32 %v638_v52, %v637_v39 }
 0x19c   :  { %v640_v41 = vpop.f32.mrf.mxu1 }
 0x19d   :  { %v444_v44 = vadd.f32 %v639_v40, %v976_v51 }
 0x19e   :  { %v641_v42 = vpop.f32.mrf.mxu1 }
 0x19f   :  { %v642_v45 = vadd.f32 %v641_v42, %v640_v41  ;;  %v506_v49 = vmax.f32 %v444_v44, 0.0 }
 0x1a0   :  { %v643_v46 = vpop.f32.mrf.mxu1 }
 0x1a1   :  { %v447_v47 = vadd.f32 %v642_v45, %v976_v51 }
 0x1a2   :  { %v644_v48 = vpop.f32.mrf.mxu1 }
 0x1a3   :  { %v507_v50 = vmax.f32 %v447_v47, 0.0  ;;  %v645_v53 = vadd.f32 %v644_v48, %v643_v46 }
 0x1a4   :  { %v646_v54 = vpop.f32.mrf.mxu1 }
 0x1a5   :  { %v983_v55 = vpack.c.bf16 %v507_v50, %v506_v49  ;;  %v452_v57 = vadd.f32 %v645_v53, %v976_v51 }
 0x1a6   :  { %v647_v56 = vpop.f32.mrf.mxu1 }
 0x1a7   :  { %v648_v58 = vadd.f32 %v647_v56, %v646_v54  ;;  %v508_v62 = vmax.f32 %v452_v57, 0.0 }
 0x1a8   :  { %v649_v59 = vpop.f32.mrf.mxu1 }
 0x1a9   :  { %v455_v60 = vadd.f32 %v648_v58, %v976_v51 }
 0x1aa   :  { %v650_v61 = vpop.f32.mrf.mxu1 }
 0x1ab   :  { %v509_v63 = vmax.f32 %v455_v60, 0.0  ;;  %v651_v0 = vadd.f32 %v650_v61, %v649_v59 }
 0x1ac   :  { %v652_v1 = vpop.f32.mrf.mxu1 }
 0x1ad   :  { %v987_v2 = vpack.c.bf16 %v509_v63, %v508_v62  ;;  %v460_v4 = vadd.f32 %v651_v0, %v976_v51 }
 0x1ae   :  { %v653_v3 = vpop.f32.mrf.mxu1 }
 0x1af   :  { %v654_v5 = vadd.f32 %v653_v3, %v652_v1  ;;  %v510_v9 = vmax.f32 %v460_v4, 0.0 }
 0x1b0   :  { %v655_v6 = vpop.f32.mrf.mxu1 }
 0x1b1   :  { %v463_v7 = vadd.f32 %v654_v5, %v976_v51  ;;  %v535_v5 = vpop.permute.xlu0 %534 }
 0x1b2   :  { %v656_v8 = vpop.f32.mrf.mxu1 }
 0x1b3   :  { %v511_v10 = vmax.f32 %v463_v7, 0.0  ;;  %v657_v11 = vadd.f32 %v656_v8, %v655_v6 }
 0x1b4   :  { %v658_v12 = vpop.f32.mrf.mxu1 }
 0x1b5   :  { %v525_v13 = vpack.c.bf16 %v511_v10, %v510_v9  ;;  %v468_v15 = vadd.f32 %v657_v11, %v976_v51 }
 0x1b6   :  { %v659_v14 = vpop.f32.mrf.mxu1 }
 0x1b7   :  { %v660_v16 = vadd.f32 %v659_v14, %v658_v12  ;;  %v512_v20 = vmax.f32 %v468_v15, 0.0 }
 0x1b8   :  { %v661_v17 = vpop.f32.mrf.mxu1 }
 0x1b9   :  { %v471_v18 = vadd.f32 %v660_v16, %v976_v51 }
 0x1ba   :  { %v662_v19 = vpop.f32.mrf.mxu1 }
 0x1bb   :  { %v513_v21 = vmax.f32 %v471_v18, 0.0  ;;  %v663_v60 = vadd.f32 %v662_v19, %v661_v17 }
 0x1bc   :  { %v664_v22 = vpop.f32.mrf.mxu1 }
 0x1bd   :  { %v526_v23 = vpack.c.bf16 %v513_v21, %v512_v20  ;;  %v476_v0 = vadd.f32 %v663_v60, %v976_v51 }
 0x1be   :  { %v665_v24 = vpop.f32.mrf.mxu1 }
 0x1bf   :  { %v666_v58 = vadd.f32 %v665_v24, %v664_v22  ;;  %v514_v3 = vmax.f32 %v476_v0, 0.0 }
 0x1c0   :  { %v667_v25 = vpop.f32.mrf.mxu1 }
 0x1c1   :  { %v479_v62 = vadd.f32 %v666_v58, %v976_v51 }
 0x1c2   :  { %v668_v26 = vpop.f32.mrf.mxu1 }
 0x1c3   :  { %v669_v50 = vadd.f32 %v668_v26, %v667_v25  ;;  %v515_v1 = vmax.f32 %v479_v62, 0.0 }
 0x1c4   :  { %v670_v27 = vpop.f32.mrf.mxu1 }
 0x1c5   :  { %v484_v57 = vadd.f32 %v669_v50, %v976_v51  ;;  %v527_v4 = vpack.c.bf16 %v515_v1, %v514_v3 }
 0x1c6   :  { %v671_v28 = vpop.f32.mrf.mxu1 }
 0x1c7   :  { %v672_v48 = vadd.f32 %v671_v28, %v670_v27  ;;  %v516_v61 = vmax.f32 %v484_v57, 0.0 }
 0x1c8   :  { %v673_v29 = vpop.f32.mrf.mxu1 }
 0x1c9   :  { %v487_v54 = vadd.f32 %v672_v48, %v976_v51 }
 0x1ca   :  { %v674_v30 = vpop.f32.mrf.mxu1 }
 0x1cb   :  { %v675_v42 = vadd.f32 %v674_v30, %v673_v29  ;;  %v517_v59 = vmax.f32 %v487_v54, 0.0 }
 0x1cc   :  { %v676_v31 = vpop.f32.mrf.mxu1 }
 0x1cd   :  { %v492_v47 = vadd.f32 %v675_v42, %v976_v51  ;;  %v528_v63 = vpack.c.bf16 %v517_v59, %v516_v61 }
 0x1ce   :  { %v677_v32 = vpop.f32.mrf.mxu1 }
 0x1cf   :  { %v678_v40 = vadd.f32 %v677_v32, %v676_v31  ;;  %v518_v53 = vmax.f32 %v492_v47, 0.0 }
 0x1d0   :  { %v679_v33 = vpop.f32.mrf.mxu1 }
 0x1d1   :  { %v495_v45 = vadd.f32 %v678_v40, %v976_v51 }
 0x1d2   :  { %v680_v34 = vpop.f32.mrf.mxu1 }
 0x1d3   :  { %v681_v35 = vadd.f32 %v680_v34, %v679_v33  ;;  %v519_v49 = vmax.f32 %v495_v45, 0.0 }
 0x1d4   :  { %v682_v36 = vpop.f32.mrf.mxu1 }
 0x1d5   :  { %v500_v39 = vadd.f32 %v681_v35, %v976_v51  ;;  %v529_v56 = vpack.c.bf16 %v519_v49, %v518_v53 }
 0x1d6   :  { %v683_v37 = vpop.f32.mrf.mxu1 }
 0x1d7   :  { %v684_v52 = vadd.f32 %v683_v37, %v682_v36  ;;  %v520_v43 = vmax.f32 %v500_v39, 0.0 }
 0x1d9   :  { %v503_v41 = vadd.f32 %v684_v52, %v976_v51  ;;  %v522_v51 = vld [vmem:[%s1021_s5] sm:$0xf] }
 0x1db   :  { %v521_v44 = vmax.f32 %v503_v41, 0.0 }
 0x1dd   :  { %v530_v46 = vpack.c.bf16 %v521_v44, %v520_v43 }
 0x1df   :  { %695 = vmatpush3.bf16.xpose.msra.mxu0 %v530_v46 }
 0x1e0   :  { %696 = vmatprep.subr.bf16.mxu0 %v764_v38 }
 0x1e7   :  { %697 = vmatpush3.bf16.xpose.msra.mxu0 %v529_v56 }
 0x1e8   :  { %698 = vmatprep.subr.bf16.mxu0 %v764_v38 }
 0x1ef   :  { %699 = vmatpush3.bf16.xpose.msra.mxu0 %v528_v63 }
 0x1f0   :  { %700 = vmatprep.subr.bf16.mxu0 %v764_v38 }
 0x1f7   :  { %701 = vmatpush3.bf16.xpose.msra.mxu0 %v527_v4 }
 0x1f8   :  { %702 = vmatprep.subr.bf16.mxu0 %v764_v38 }
 0x1ff   :  { %703 = vmatpush3.bf16.xpose.msra.mxu0 %v526_v23 }
 0x200   :  { %704 = vmatprep.subr.bf16.mxu0 %v764_v38 }
 0x207   :  { %705 = vmatpush3.bf16.xpose.msra.mxu0 %v525_v13 }
 0x208   :  { %706 = vmatprep.subr.bf16.mxu0 %v764_v38 }
 0x20f   :  { %707 = vmatpush3.bf16.xpose.msra.mxu0 %v987_v2 }
 0x210   :  { %708 = vmatprep.subr.bf16.mxu0 %v764_v38 }
 0x217   :  { %709 = vmatpush3.bf16.xpose.msra.mxu0 %v983_v55 }
 0x21e   :  { %711 = vmatmul.mubr.bf16.vlgmr.msra.gmra.mxu0 %v522_v51 }
 0x2de   :  { %v571_v6 = vpop.f32.mrf.mxu0 }
 0x2df   :  { %v572_v7 = vadd.f32 %v571_v6, %v535_v5 }
 0x2e0   :  { %v712_v8 = vpop.f32.mrf.mxu0 }
 0x2e1   :  { %577 = vst [vmem:[#allocation2] sm:$0xff] %v572_v7 }
 0x2e2   :  { %v574_v9 = vpop.f32.mrf.mxu0 }
 0x2e3   :  { %752 = shalt.err (!%p749_p4)
}
 0x2e4   :  { %587 = dma.vmem_to_hbm [thread:$0]  %s585_s28, 128, %s1023_s7, [#allocation3]   ;;  %v713_v38 = vpop.f32.mrf.mxu0 }
 0x2e5   :  { %761 = dma.done.wait [#allocation3], 128  }
 0x2e6   :  { %762 = vsyncadd [#allocation3], 4294967168 }
 0x2e7   :  { %591 = vsyncpa [#allocation3], 1 }

</bundles_post_ra>
